<compile_context>
chip_gen: v7x
topology: tpu7x:2x2x1
jax: 0.10.0
libtpu: 0.0.40
codegen_flags: <defaults>
</compile_context>

<pallas_src>
import jax
import jax.numpy as jnp
from jax.experimental import pallas as pl
from jax.experimental.pallas import tpu as pltpu

EPS = 1e-5  # nn.BatchNorm1d default eps


def _round_up(x, m):
    return (x + m - 1) // m * m


def _make_dense_block_kernel(num_convs, n, l, c_pad, mxu_dtype):
    rows = n * l
    inv_rows = 1.0 / rows

    def kernel(x_ref, nf_ref, nl_ref, gamma_ref, beta_ref, bias_ref,
               w0_ref, w1_ref, w2_ref, out_ref):
        not_first = nf_ref[...]            # (rows, c_pad) 0/1 f32, 0 where l == 0
        not_last = nl_ref[...]             # (rows, c_pad) 0/1 f32, 0 where l == L-1

        # Growing dense-concat activation, lane-padded to c_pad; unused columns stay 0.
        slab = x_ref[...]                  # (rows, c_pad) f32

        for i in range(num_convs):         # unrolled: tiny, static channel counts
            gamma = gamma_ref[i]           # (1, c_pad): real gamma | 1.0 padding
            beta = beta_ref[i]             # (1, c_pad): real beta  | 0.0 padding
            bias = bias_ref[i]             # (1, c_pad): conv bias in the new columns

            # --- BatchNorm1d (training-mode batch stats), two-pass, fused affine ---
            mean = jnp.sum(slab, axis=0, keepdims=True) * inv_rows
            centered = slab - mean
            var = jnp.sum(centered * centered, axis=0, keepdims=True) * inv_rows
            scale = gamma * jax.lax.rsqrt(var + EPS)

            # --- ReLU --- (zero columns stay exactly zero: centered == 0, beta pad == 0)
            a = jnp.maximum(centered * scale + beta, 0.0)

            # --- Conv1d(k=3, pad=1): three tap matmuls, f32 accumulation ---
            # Tap weights are zero-padded (c_pad, c_pad) with the real block at
            # [0:c_in, c_in:c_in+growth], so y lands directly in the new channels' lanes
            # and the dense concat below is a plain full-width add.
            y = jnp.dot(a.astype(mxu_dtype), w1_ref[i],
                        preferred_element_type=jnp.float32)
            a_prev = (jnp.roll(a, 1, axis=0) * not_first).astype(mxu_dtype)
            y += jnp.dot(a_prev, w0_ref[i], preferred_element_type=jnp.float32)
            a_next = (jnp.roll(a, -1, axis=0) * not_last).astype(mxu_dtype)
            y += jnp.dot(a_next, w2_ref[i], preferred_element_type=jnp.float32)

            slab = slab + y + bias         # dense concat: the new channels were zero

        out_ref[...] = slab                # single wide, unmasked lane-dense store

    return kernel


def _vmem_limit_bytes(requested_bytes):
    """Generation-aware scoped-VMEM cap (~80% of physical: ~102 MiB v5e/v6e, ~51 MiB v7x)."""
    try:
        cap = int(pltpu.get_tpu_info().vmem_capacity_bytes) * 4 // 5
    except Exception:  # no hardware query available: conservative (75% of v7x's 64 MiB)
        cap = 48 << 20
    return int(max(min(requested_bytes, cap), 1 << 20))


def _pack_params(params, c0, growth, c_pad, mxu_dtype):
    """Transpose / zero-pad / pre-cast each block's params to lane-aligned kernel operands."""
    gammas, betas, biases, w0s, w1s, w2s = [], [], [], [], [], []
    c_in = c0
    for gamma, beta, w_pt, b in params:
        gammas.append(jnp.ones((c_pad,), jnp.float32).at[:c_in].set(gamma))
        betas.append(jnp.zeros((c_pad,), jnp.float32).at[:c_in].set(beta))
        biases.append(jnp.zeros((c_pad,), jnp.float32).at[c_in:c_in + growth].set(b))
        for k, dst in ((0, w0s), (1, w1s), (2, w2s)):
            # PyTorch (C_out, C_in, K) tap k -> (C_in, C_out), embedded at the block's
            # input rows / output columns inside the zero-padded (c_pad, c_pad) weight.
            wk = jnp.transpose(w_pt[:, :, k])
            w_full = jnp.zeros((c_pad, c_pad), jnp.float32)
            w_full = w_full.at[:c_in, c_in:c_in + growth].set(wk)
            dst.append(w_full.astype(mxu_dtype))
        c_in += growth
    vec = lambda xs: jnp.stack(xs)[:, None, :]          # (num_convs, 1, c_pad)
    return (vec(gammas), vec(betas), vec(biases),
            jnp.stack(w0s), jnp.stack(w1s), jnp.stack(w2s))


def dense_block_forward(x_ncl, params, growth, mxu_dtype=jnp.bfloat16):
    """DenseBlock.forward.  x_ncl: (N, C0, L) float32 in PyTorch NCL layout."""
    n, c0, l = x_ncl.shape
    num_convs = len(params)
    c_total = c0 + num_convs * growth
    c_pad = max(128, _round_up(c_total, 128))            # lane-dense channel axis
    rows = n * l

    # Channels-last slab view, zero-padded on the lane axis: (N, C0, L) -> (N*L, c_pad).
    x2d = jnp.transpose(x_ncl, (0, 2, 1)).reshape(rows, c0)
    x_pad = jnp.zeros((rows, c_pad), jnp.float32).at[:, :c0].set(x2d)

    # Per-sample boundary masks: zero the rows that a +/-1 row shift wraps across.
    lpos = jnp.arange(rows, dtype=jnp.int32) % l
    not_first = jnp.broadcast_to((lpos != 0).astype(jnp.float32)[:, None], (rows, c_pad))
    not_last = jnp.broadcast_to((lpos != l - 1).astype(jnp.float32)[:, None], (rows, c_pad))

    packed = _pack_params(params, c0, growth, c_pad, mxu_dtype)

    w_itemsize = jnp.dtype(mxu_dtype).itemsize
    slab_bytes = rows * c_pad * 4
    param_bytes = num_convs * (3 * c_pad * c_pad * w_itemsize + 3 * c_pad * 4)
    requested = 10 * slab_bytes + 2 * param_bytes + (2 << 20)

    out_pad = pl.pallas_call(
        _make_dense_block_kernel(num_convs, n, l, c_pad, mxu_dtype),
        out_shape=jax.ShapeDtypeStruct((rows, c_pad), jnp.float32),
        in_specs=[pl.BlockSpec(memory_space=pltpu.MemorySpace.VMEM)] * 9,
        out_specs=pl.BlockSpec(memory_space=pltpu.MemorySpace.VMEM),
        compiler_params=pltpu.CompilerParams(
            vmem_limit_bytes=_vmem_limit_bytes(requested)),
    )(x_pad, not_first, not_last, *packed)

    out2d = out_pad[:, :c_total]
    return jnp.transpose(out2d.reshape(n, l, c_total), (0, 2, 1))   # back to NCL


def init_dense_block_params(key, num_convs, input_channels, growth):
    """Conv1d: PyTorch-default uniform(+-1/sqrt(C_in*K)).  BN affine params are perturbed
    around the PyTorch defaults (gamma=1, beta=0) so validation exercises the scale/shift
    path instead of an identity affine."""
    params = []
    for i in range(num_convs):
        c_in = input_channels + growth * i
        key, k_w, k_b, k_g, k_bt = jax.random.split(key, 5)
        bound = 1.0 / (c_in * 3) ** 0.5
        w_pt = jax.random.uniform(k_w, (growth, c_in, 3), jnp.float32, -bound, bound)
        b = jax.random.uniform(k_b, (growth,), jnp.float32, -bound, bound)
        gamma = 1.0 + 0.1 * jax.random.normal(k_g, (c_in,), jnp.float32)
        beta = 0.1 * jax.random.normal(k_bt, (c_in,), jnp.float32)
        params.append((gamma, beta, w_pt, b))
    return params


def reference_forward(x_ncl, params):
    """Pure-JAX reference with PyTorch train-mode BN semantics (for validation)."""
    x = x_ncl
    for gamma, beta, w_pt, b in params:
        mean = jnp.mean(x, axis=(0, 2), keepdims=True)
        var = jnp.mean((x - mean) ** 2, axis=(0, 2), keepdims=True)
        a = jnp.maximum((x - mean) * jax.lax.rsqrt(var + EPS) * gamma[None, :, None]
                        + beta[None, :, None], 0.0)
        y = jax.lax.conv_general_dilated(
            a, w_pt, window_strides=(1,), padding=((1, 1),),
            dimension_numbers=("NCH", "OIH", "NCH")) + b[None, :, None]
        x = jnp.concatenate([x, y], axis=1)
    return x


if __name__ == "__main__":
    num_convs = 3
    input_channels = 4
    growth = 4
    N, L = 2, 16

    key = jax.random.PRNGKey(0)
    key, k_x = jax.random.split(key)
    x = jax.random.normal(k_x, (N, input_channels, L), dtype=jnp.float32)
    params = init_dense_block_params(key, num_convs, input_channels, growth)

    c_total = input_channels + num_convs * growth
    ref = reference_forward(x, params)

    # Production path: bf16 MXU operands, f32 accumulation; tolerance covers the cast.
    out = jax.block_until_ready(
        dense_block_forward(x, params, growth, mxu_dtype=jnp.bfloat16))
    assert out.shape == (N, c_total, L), out.shape
    assert bool(jnp.all(jnp.isfinite(out)))
    assert jnp.allclose(out, ref, rtol=5e-2, atol=5e-2), \
        float(jnp.max(jnp.abs(out - ref)))

    # Structural parity check with f32 MXU operands.  Tolerance is kept moderate (not
    # 1e-5) because default TPU matmul precision may still round operands; genuine
    # layout / tap / channel-offset bugs would show up as O(1) errors and still fail.
    out_f32 = jax.block_until_ready(
        dense_block_forward(x, params, growth, mxu_dtype=jnp.float32))
    assert out_f32.shape == (N, c_total, L), out_f32.shape
    assert bool(jnp.all(jnp.isfinite(out_f32)))
    assert jnp.allclose(out_f32, ref, rtol=2e-2, atol=2e-2), \
        float(jnp.max(jnp.abs(out_f32 - ref)))

    print("KERNEL_OK")
</pallas_src>

<mosaic_0001>
module attributes {stable_mosaic.version = 11 : i64} {
  func.func @kernel(%arg0: memref<32x128xf32, #tpu.memory_space<vmem>>, %arg1: memref<32x128xf32, #tpu.memory_space<vmem>>, %arg2: memref<32x128xf32, #tpu.memory_space<vmem>>, %arg3: memref<3x1x128xf32, #tpu.memory_space<vmem>>, %arg4: memref<3x1x128xf32, #tpu.memory_space<vmem>>, %arg5: memref<3x1x128xf32, #tpu.memory_space<vmem>>, %arg6: memref<3x128x128xbf16, #tpu.memory_space<vmem>>, %arg7: memref<3x128x128xbf16, #tpu.memory_space<vmem>>, %arg8: memref<3x128x128xbf16, #tpu.memory_space<vmem>>, %arg9: memref<32x128xf32, #tpu.memory_space<vmem>>) attributes {dimension_semantics = [], scalar_prefetch = 0 : i64, scratch_operands = 0 : i64, tpu.core_type = #tpu.core_type<tc>} {
    %c0 = arith.constant 0 : index
    %c0_0 = arith.constant 0 : index
    %0 = vector.load %arg1[%c0, %c0_0] : memref<32x128xf32, #tpu.memory_space<vmem>>, vector<32x128xf32>
    %c0_1 = arith.constant 0 : index
    %c0_2 = arith.constant 0 : index
    %1 = vector.load %arg2[%c0_1, %c0_2] : memref<32x128xf32, #tpu.memory_space<vmem>>, vector<32x128xf32>
    %c0_3 = arith.constant 0 : index
    %c0_4 = arith.constant 0 : index
    %2 = vector.load %arg0[%c0_3, %c0_4] : memref<32x128xf32, #tpu.memory_space<vmem>>, vector<32x128xf32>
    %c0_5 = arith.constant 0 : index
    %c0_6 = arith.constant 0 : index
    %c0_7 = arith.constant 0 : index
    %3 = vector.load %arg3[%c0_5, %c0_6, %c0_7] : memref<3x1x128xf32, #tpu.memory_space<vmem>>, vector<1x1x128xf32>
    %4 = vector.shape_cast %3 : vector<1x1x128xf32> to vector<1x128xf32>
    %c0_8 = arith.constant 0 : index
    %c0_9 = arith.constant 0 : index
    %c0_10 = arith.constant 0 : index
    %5 = vector.load %arg4[%c0_8, %c0_9, %c0_10] : memref<3x1x128xf32, #tpu.memory_space<vmem>>, vector<1x1x128xf32>
    %6 = vector.shape_cast %5 : vector<1x1x128xf32> to vector<1x128xf32>
    %c0_11 = arith.constant 0 : index
    %c0_12 = arith.constant 0 : index
    %c0_13 = arith.constant 0 : index
    %7 = vector.load %arg5[%c0_11, %c0_12, %c0_13] : memref<3x1x128xf32, #tpu.memory_space<vmem>>, vector<1x1x128xf32>
    %8 = vector.shape_cast %7 : vector<1x1x128xf32> to vector<1x128xf32>
    %cst = arith.constant dense<0.000000e+00> : vector<128xf32>
    %9 = vector.multi_reduction <add>, %2, %cst [0] : vector<32x128xf32> to vector<128xf32>
    %10 = vector.shape_cast %9 : vector<128xf32> to vector<1x128xf32>
    %cst_14 = arith.constant 3.125000e-02 : f32
    %11 = vector.broadcast %cst_14 : f32 to vector<1x128xf32>
    %12 = arith.mulf %10, %11 : vector<1x128xf32>
    %13 = vector.broadcast %12 : vector<1x128xf32> to vector<32x128xf32>
    %14 = arith.subf %2, %13 : vector<32x128xf32>
    %15 = arith.mulf %14, %14 : vector<32x128xf32>
    %cst_15 = arith.constant dense<0.000000e+00> : vector<128xf32>
    %16 = vector.multi_reduction <add>, %15, %cst_15 [0] : vector<32x128xf32> to vector<128xf32>
    %17 = vector.shape_cast %16 : vector<128xf32> to vector<1x128xf32>
    %cst_16 = arith.constant 3.125000e-02 : f32
    %18 = vector.broadcast %cst_16 : f32 to vector<1x128xf32>
    %19 = arith.mulf %17, %18 : vector<1x128xf32>
    %cst_17 = arith.constant 9.99999974E-6 : f32
    %20 = vector.broadcast %cst_17 : f32 to vector<1x128xf32>
    %21 = arith.addf %19, %20 : vector<1x128xf32>
    %22 = math.rsqrt %21 : vector<1x128xf32>
    %23 = arith.mulf %4, %22 : vector<1x128xf32>
    %24 = vector.broadcast %23 : vector<1x128xf32> to vector<32x128xf32>
    %25 = arith.mulf %14, %24 : vector<32x128xf32>
    %26 = vector.broadcast %6 : vector<1x128xf32> to vector<32x128xf32>
    %27 = arith.addf %25, %26 : vector<32x128xf32>
    %cst_18 = arith.constant 0.000000e+00 : f32
    %28 = vector.broadcast %cst_18 : f32 to vector<32x128xf32>
    %29 = arith.maximumf %27, %28 : vector<32x128xf32>
    %30 = arith.truncf %29 : vector<32x128xf32> to vector<32x128xbf16>
    %c0_19 = arith.constant 0 : index
    %c0_20 = arith.constant 0 : index
    %c0_21 = arith.constant 0 : index
    %31 = vector.load %arg7[%c0_19, %c0_20, %c0_21] : memref<3x128x128xbf16, #tpu.memory_space<vmem>>, vector<1x128x128xbf16>
    %32 = vector.shape_cast %31 : vector<1x128x128xbf16> to vector<128x128xbf16>
    %cst_22 = arith.constant dense<0.000000e+00> : vector<32x128xf32>
    %33 = tpu.matmul %30, %32, %cst_22 {dimension_numbers = #tpu.dot_dimension_numbers<[1], [0], [0], [1], [0, 0, 1, 1], [], []>} : vector<32x128xbf16>, vector<128x128xbf16>, vector<32x128xf32> -> vector<32x128xf32>
    %34 = vector.extract_strided_slice %29 {offsets = [31, 0], sizes = [1, 128], strides = [1, 1]} : vector<32x128xf32> to vector<1x128xf32>
    %35 = vector.extract_strided_slice %29 {offsets = [0, 0], sizes = [31, 128], strides = [1, 1]} : vector<32x128xf32> to vector<31x128xf32>
    %36 = tpu.concatenate %34, %35 in 0 : vector<1x128xf32>, vector<31x128xf32> -> vector<32x128xf32>
    %37 = arith.mulf %36, %0 : vector<32x128xf32>
    %38 = arith.truncf %37 : vector<32x128xf32> to vector<32x128xbf16>
    %c0_23 = arith.constant 0 : index
    %c0_24 = arith.constant 0 : index
    %c0_25 = arith.constant 0 : index
    %39 = vector.load %arg6[%c0_23, %c0_24, %c0_25] : memref<3x128x128xbf16, #tpu.memory_space<vmem>>, vector<1x128x128xbf16>
    %40 = vector.shape_cast %39 : vector<1x128x128xbf16> to vector<128x128xbf16>
    %cst_26 = arith.constant dense<0.000000e+00> : vector<32x128xf32>
    %41 = tpu.matmul %38, %40, %cst_26 {dimension_numbers = #tpu.dot_dimension_numbers<[1], [0], [0], [1], [0, 0, 1, 1], [], []>} : vector<32x128xbf16>, vector<128x128xbf16>, vector<32x128xf32> -> vector<32x128xf32>
    %42 = arith.addf %33, %41 : vector<32x128xf32>
    %43 = vector.extract_strided_slice %29 {offsets = [1, 0], sizes = [31, 128], strides = [1, 1]} : vector<32x128xf32> to vector<31x128xf32>
    %44 = vector.extract_strided_slice %29 {offsets = [0, 0], sizes = [1, 128], strides = [1, 1]} : vector<32x128xf32> to vector<1x128xf32>
    %45 = tpu.concatenate %43, %44 in 0 : vector<31x128xf32>, vector<1x128xf32> -> vector<32x128xf32>
    %46 = arith.mulf %45, %1 : vector<32x128xf32>
    %47 = arith.truncf %46 : vector<32x128xf32> to vector<32x128xbf16>
    %c0_27 = arith.constant 0 : index
    %c0_28 = arith.constant 0 : index
    %c0_29 = arith.constant 0 : index
    %48 = vector.load %arg8[%c0_27, %c0_28, %c0_29] : memref<3x128x128xbf16, #tpu.memory_space<vmem>>, vector<1x128x128xbf16>
    %49 = vector.shape_cast %48 : vector<1x128x128xbf16> to vector<128x128xbf16>
    %cst_30 = arith.constant dense<0.000000e+00> : vector<32x128xf32>
    %50 = tpu.matmul %47, %49, %cst_30 {dimension_numbers = #tpu.dot_dimension_numbers<[1], [0], [0], [1], [0, 0, 1, 1], [], []>} : vector<32x128xbf16>, vector<128x128xbf16>, vector<32x128xf32> -> vector<32x128xf32>
    %51 = arith.addf %42, %50 : vector<32x128xf32>
    %52 = arith.addf %2, %51 : vector<32x128xf32>
    %53 = vector.broadcast %8 : vector<1x128xf32> to vector<32x128xf32>
    %54 = arith.addf %52, %53 : vector<32x128xf32>
    %c1 = arith.constant 1 : index
    %c0_31 = arith.constant 0 : index
    %c0_32 = arith.constant 0 : index
    %55 = vector.load %arg3[%c1, %c0_31, %c0_32] : memref<3x1x128xf32, #tpu.memory_space<vmem>>, vector<1x1x128xf32>
    %56 = vector.shape_cast %55 : vector<1x1x128xf32> to vector<1x128xf32>
    %c1_33 = arith.constant 1 : index
    %c0_34 = arith.constant 0 : index
    %c0_35 = arith.constant 0 : index
    %57 = vector.load %arg4[%c1_33, %c0_34, %c0_35] : memref<3x1x128xf32, #tpu.memory_space<vmem>>, vector<1x1x128xf32>
    %58 = vector.shape_cast %57 : vector<1x1x128xf32> to vector<1x128xf32>
    %c1_36 = arith.constant 1 : index
    %c0_37 = arith.constant 0 : index
    %c0_38 = arith.constant 0 : index
    %59 = vector.load %arg5[%c1_36, %c0_37, %c0_38] : memref<3x1x128xf32, #tpu.memory_space<vmem>>, vector<1x1x128xf32>
    %60 = vector.shape_cast %59 : vector<1x1x128xf32> to vector<1x128xf32>
    %cst_39 = arith.constant dense<0.000000e+00> : vector<128xf32>
    %61 = vector.multi_reduction <add>, %54, %cst_39 [0] : vector<32x128xf32> to vector<128xf32>
    %62 = vector.shape_cast %61 : vector<128xf32> to vector<1x128xf32>
    %cst_40 = arith.constant 3.125000e-02 : f32
    %63 = vector.broadcast %cst_40 : f32 to vector<1x128xf32>
    %64 = arith.mulf %62, %63 : vector<1x128xf32>
    %65 = vector.broadcast %64 : vector<1x128xf32> to vector<32x128xf32>
    %66 = arith.subf %54, %65 : vector<32x128xf32>
    %67 = arith.mulf %66, %66 : vector<32x128xf32>
    %cst_41 = arith.constant dense<0.000000e+00> : vector<128xf32>
    %68 = vector.multi_reduction <add>, %67, %cst_41 [0] : vector<32x128xf32> to vector<128xf32>
    %69 = vector.shape_cast %68 : vector<128xf32> to vector<1x128xf32>
    %cst_42 = arith.constant 3.125000e-02 : f32
    %70 = vector.broadcast %cst_42 : f32 to vector<1x128xf32>
    %71 = arith.mulf %69, %70 : vector<1x128xf32>
    %cst_43 = arith.constant 9.99999974E-6 : f32
    %72 = vector.broadcast %cst_43 : f32 to vector<1x128xf32>
    %73 = arith.addf %71, %72 : vector<1x128xf32>
    %74 = math.rsqrt %73 : vector<1x128xf32>
    %75 = arith.mulf %56, %74 : vector<1x128xf32>
    %76 = vector.broadcast %75 : vector<1x128xf32> to vector<32x128xf32>
    %77 = arith.mulf %66, %76 : vector<32x128xf32>
    %78 = vector.broadcast %58 : vector<1x128xf32> to vector<32x128xf32>
    %79 = arith.addf %77, %78 : vector<32x128xf32>
    %cst_44 = arith.constant 0.000000e+00 : f32
    %80 = vector.broadcast %cst_44 : f32 to vector<32x128xf32>
    %81 = arith.maximumf %79, %80 : vector<32x128xf32>
    %82 = arith.truncf %81 : vector<32x128xf32> to vector<32x128xbf16>
    %c1_45 = arith.constant 1 : index
    %c0_46 = arith.constant 0 : index
    %c0_47 = arith.constant 0 : index
    %83 = vector.load %arg7[%c1_45, %c0_46, %c0_47] : memref<3x128x128xbf16, #tpu.memory_space<vmem>>, vector<1x128x128xbf16>
    %84 = vector.shape_cast %83 : vector<1x128x128xbf16> to vector<128x128xbf16>
    %cst_48 = arith.constant dense<0.000000e+00> : vector<32x128xf32>
    %85 = tpu.matmul %82, %84, %cst_48 {dimension_numbers = #tpu.dot_dimension_numbers<[1], [0], [0], [1], [0, 0, 1, 1], [], []>} : vector<32x128xbf16>, vector<128x128xbf16>, vector<32x128xf32> -> vector<32x128xf32>
    %86 = vector.extract_strided_slice %81 {offsets = [31, 0], sizes = [1, 128], strides = [1, 1]} : vector<32x128xf32> to vector<1x128xf32>
    %87 = vector.extract_strided_slice %81 {offsets = [0, 0], sizes = [31, 128], strides = [1, 1]} : vector<32x128xf32> to vector<31x128xf32>
    %88 = tpu.concatenate %86, %87 in 0 : vector<1x128xf32>, vector<31x128xf32> -> vector<32x128xf32>
    %89 = arith.mulf %88, %0 : vector<32x128xf32>
    %90 = arith.truncf %89 : vector<32x128xf32> to vector<32x128xbf16>
    %c1_49 = arith.constant 1 : index
    %c0_50 = arith.constant 0 : index
    %c0_51 = arith.constant 0 : index
    %91 = vector.load %arg6[%c1_49, %c0_50, %c0_51] : memref<3x128x128xbf16, #tpu.memory_space<vmem>>, vector<1x128x128xbf16>
    %92 = vector.shape_cast %91 : vector<1x128x128xbf16> to vector<128x128xbf16>
    %cst_52 = arith.constant dense<0.000000e+00> : vector<32x128xf32>
    %93 = tpu.matmul %90, %92, %cst_52 {dimension_numbers = #tpu.dot_dimension_numbers<[1], [0], [0], [1], [0, 0, 1, 1], [], []>} : vector<32x128xbf16>, vector<128x128xbf16>, vector<32x128xf32> -> vector<32x128xf32>
    %94 = arith.addf %85, %93 : vector<32x128xf32>
    %95 = vector.extract_strided_slice %81 {offsets = [1, 0], sizes = [31, 128], strides = [1, 1]} : vector<32x128xf32> to vector<31x128xf32>
    %96 = vector.extract_strided_slice %81 {offsets = [0, 0], sizes = [1, 128], strides = [1, 1]} : vector<32x128xf32> to vector<1x128xf32>
    %97 = tpu.concatenate %95, %96 in 0 : vector<31x128xf32>, vector<1x128xf32> -> vector<32x128xf32>
    %98 = arith.mulf %97, %1 : vector<32x128xf32>
    %99 = arith.truncf %98 : vector<32x128xf32> to vector<32x128xbf16>
    %c1_53 = arith.constant 1 : index
    %c0_54 = arith.constant 0 : index
    %c0_55 = arith.constant 0 : index
    %100 = vector.load %arg8[%c1_53, %c0_54, %c0_55] : memref<3x128x128xbf16, #tpu.memory_space<vmem>>, vector<1x128x128xbf16>
    %101 = vector.shape_cast %100 : vector<1x128x128xbf16> to vector<128x128xbf16>
    %cst_56 = arith.constant dense<0.000000e+00> : vector<32x128xf32>
    %102 = tpu.matmul %99, %101, %cst_56 {dimension_numbers = #tpu.dot_dimension_numbers<[1], [0], [0], [1], [0, 0, 1, 1], [], []>} : vector<32x128xbf16>, vector<128x128xbf16>, vector<32x128xf32> -> vector<32x128xf32>
    %103 = arith.addf %94, %102 : vector<32x128xf32>
    %104 = arith.addf %54, %103 : vector<32x128xf32>
    %105 = vector.broadcast %60 : vector<1x128xf32> to vector<32x128xf32>
    %106 = arith.addf %104, %105 : vector<32x128xf32>
    %c2 = arith.constant 2 : index
    %c0_57 = arith.constant 0 : index
    %c0_58 = arith.constant 0 : index
    %107 = vector.load %arg3[%c2, %c0_57, %c0_58] : memref<3x1x128xf32, #tpu.memory_space<vmem>>, vector<1x1x128xf32>
    %108 = vector.shape_cast %107 : vector<1x1x128xf32> to vector<1x128xf32>
    %c2_59 = arith.constant 2 : index
    %c0_60 = arith.constant 0 : index
    %c0_61 = arith.constant 0 : index
    %109 = vector.load %arg4[%c2_59, %c0_60, %c0_61] : memref<3x1x128xf32, #tpu.memory_space<vmem>>, vector<1x1x128xf32>
    %110 = vector.shape_cast %109 : vector<1x1x128xf32> to vector<1x128xf32>
    %c2_62 = arith.constant 2 : index
    %c0_63 = arith.constant 0 : index
    %c0_64 = arith.constant 0 : index
    %111 = vector.load %arg5[%c2_62, %c0_63, %c0_64] : memref<3x1x128xf32, #tpu.memory_space<vmem>>, vector<1x1x128xf32>
    %112 = vector.shape_cast %111 : vector<1x1x128xf32> to vector<1x128xf32>
    %cst_65 = arith.constant dense<0.000000e+00> : vector<128xf32>
    %113 = vector.multi_reduction <add>, %106, %cst_65 [0] : vector<32x128xf32> to vector<128xf32>
    %114 = vector.shape_cast %113 : vector<128xf32> to vector<1x128xf32>
    %cst_66 = arith.constant 3.125000e-02 : f32
    %115 = vector.broadcast %cst_66 : f32 to vector<1x128xf32>
    %116 = arith.mulf %114, %115 : vector<1x128xf32>
    %117 = vector.broadcast %116 : vector<1x128xf32> to vector<32x128xf32>
    %118 = arith.subf %106, %117 : vector<32x128xf32>
    %119 = arith.mulf %118, %118 : vector<32x128xf32>
    %cst_67 = arith.constant dense<0.000000e+00> : vector<128xf32>
    %120 = vector.multi_reduction <add>, %119, %cst_67 [0] : vector<32x128xf32> to vector<128xf32>
    %121 = vector.shape_cast %120 : vector<128xf32> to vector<1x128xf32>
    %cst_68 = arith.constant 3.125000e-02 : f32
    %122 = vector.broadcast %cst_68 : f32 to vector<1x128xf32>
    %123 = arith.mulf %121, %122 : vector<1x128xf32>
    %cst_69 = arith.constant 9.99999974E-6 : f32
    %124 = vector.broadcast %cst_69 : f32 to vector<1x128xf32>
    %125 = arith.addf %123, %124 : vector<1x128xf32>
    %126 = math.rsqrt %125 : vector<1x128xf32>
    %127 = arith.mulf %108, %126 : vector<1x128xf32>
    %128 = vector.broadcast %127 : vector<1x128xf32> to vector<32x128xf32>
    %129 = arith.mulf %118, %128 : vector<32x128xf32>
    %130 = vector.broadcast %110 : vector<1x128xf32> to vector<32x128xf32>
    %131 = arith.addf %129, %130 : vector<32x128xf32>
    %cst_70 = arith.constant 0.000000e+00 : f32
    %132 = vector.broadcast %cst_70 : f32 to vector<32x128xf32>
    %133 = arith.maximumf %131, %132 : vector<32x128xf32>
    %134 = arith.truncf %133 : vector<32x128xf32> to vector<32x128xbf16>
    %c2_71 = arith.constant 2 : index
    %c0_72 = arith.constant 0 : index
    %c0_73 = arith.constant 0 : index
    %135 = vector.load %arg7[%c2_71, %c0_72, %c0_73] : memref<3x128x128xbf16, #tpu.memory_space<vmem>>, vector<1x128x128xbf16>
    %136 = vector.shape_cast %135 : vector<1x128x128xbf16> to vector<128x128xbf16>
    %cst_74 = arith.constant dense<0.000000e+00> : vector<32x128xf32>
    %137 = tpu.matmul %134, %136, %cst_74 {dimension_numbers = #tpu.dot_dimension_numbers<[1], [0], [0], [1], [0, 0, 1, 1], [], []>} : vector<32x128xbf16>, vector<128x128xbf16>, vector<32x128xf32> -> vector<32x128xf32>
    %138 = vector.extract_strided_slice %133 {offsets = [31, 0], sizes = [1, 128], strides = [1, 1]} : vector<32x128xf32> to vector<1x128xf32>
    %139 = vector.extract_strided_slice %133 {offsets = [0, 0], sizes = [31, 128], strides = [1, 1]} : vector<32x128xf32> to vector<31x128xf32>
    %140 = tpu.concatenate %138, %139 in 0 : vector<1x128xf32>, vector<31x128xf32> -> vector<32x128xf32>
    %141 = arith.mulf %140, %0 : vector<32x128xf32>
    %142 = arith.truncf %141 : vector<32x128xf32> to vector<32x128xbf16>
    %c2_75 = arith.constant 2 : index
    %c0_76 = arith.constant 0 : index
    %c0_77 = arith.constant 0 : index
    %143 = vector.load %arg6[%c2_75, %c0_76, %c0_77] : memref<3x128x128xbf16, #tpu.memory_space<vmem>>, vector<1x128x128xbf16>
    %144 = vector.shape_cast %143 : vector<1x128x128xbf16> to vector<128x128xbf16>
    %cst_78 = arith.constant dense<0.000000e+00> : vector<32x128xf32>
    %145 = tpu.matmul %142, %144, %cst_78 {dimension_numbers = #tpu.dot_dimension_numbers<[1], [0], [0], [1], [0, 0, 1, 1], [], []>} : vector<32x128xbf16>, vector<128x128xbf16>, vector<32x128xf32> -> vector<32x128xf32>
    %146 = arith.addf %137, %145 : vector<32x128xf32>
    %147 = vector.extract_strided_slice %133 {offsets = [1, 0], sizes = [31, 128], strides = [1, 1]} : vector<32x128xf32> to vector<31x128xf32>
    %148 = vector.extract_strided_slice %133 {offsets = [0, 0], sizes = [1, 128], strides = [1, 1]} : vector<32x128xf32> to vector<1x128xf32>
    %149 = tpu.concatenate %147, %148 in 0 : vector<31x128xf32>, vector<1x128xf32> -> vector<32x128xf32>
    %150 = arith.mulf %149, %1 : vector<32x128xf32>
    %151 = arith.truncf %150 : vector<32x128xf32> to vector<32x128xbf16>
    %c2_79 = arith.constant 2 : index
    %c0_80 = arith.constant 0 : index
    %c0_81 = arith.constant 0 : index
    %152 = vector.load %arg8[%c2_79, %c0_80, %c0_81] : memref<3x128x128xbf16, #tpu.memory_space<vmem>>, vector<1x128x128xbf16>
    %153 = vector.shape_cast %152 : vector<1x128x128xbf16> to vector<128x128xbf16>
    %cst_82 = arith.constant dense<0.000000e+00> : vector<32x128xf32>
    %154 = tpu.matmul %151, %153, %cst_82 {dimension_numbers = #tpu.dot_dimension_numbers<[1], [0], [0], [1], [0, 0, 1, 1], [], []>} : vector<32x128xbf16>, vector<128x128xbf16>, vector<32x128xf32> -> vector<32x128xf32>
    %155 = arith.addf %146, %154 : vector<32x128xf32>
    %156 = arith.addf %106, %155 : vector<32x128xf32>
    %157 = vector.broadcast %112 : vector<1x128xf32> to vector<32x128xf32>
    %158 = arith.addf %156, %157 : vector<32x128xf32>
    %c0_83 = arith.constant 0 : index
    %c0_84 = arith.constant 0 : index
    %159 = vector.load %arg9[%c0_83, %c0_84] : memref<32x128xf32, #tpu.memory_space<vmem>>, vector<32x128xf32>
    tpu.vector_store %arg9[%c0_83, %c0_84], %158 {strides = array<i32>} : memref<32x128xf32, #tpu.memory_space<vmem>>, vector<32x128xf32>,
    return
  }
}

</mosaic_0001>

<bundles_post_ra>
// kernel: tpu_custom_call.1
= control target key start
LH: loop header
LB: loop body
LE: loop exit
PB: predicated region body
PF: predicated region fallthrough
CT: control target
= control target key end

     0   :  { %14 = vsyncpa [#allocation3], 0  ;;  %s2564_s0 = inlined_call_operand.hbm [shape: f32[32,128], index: 0, kind: input, shape index: {}]   ;;  %s2565_s1 = inlined_call_operand.hbm [shape: f32[32,128], index: 1, kind: input, shape index: {}]   ;;  %s2566_s2 = inlined_call_operand.hbm [shape: f32[32,128], index: 2, kind: input, shape index: {}]   ;;  %s2567_s3 = inlined_call_operand.vmem [shape: f32[3,1,128], index: 3, kind: input, shape index: {}]   ;;  %s2568_s4 = inlined_call_operand.vmem [shape: f32[3,1,128], index: 4, kind: input, shape index: {}]   ;;  %s2569_s5 = inlined_call_operand.vmem [shape: f32[3,1,128], index: 5, kind: input, shape index: {}]   ;;  %s2570_s6 = inlined_call_operand.hbm [shape: bf16[3,128,128], index: 6, kind: input, shape index: {}]   ;;  %s2571_s7 = inlined_call_operand.hbm [shape: bf16[3,128,128], index: 7, kind: input, shape index: {}]   ;;  %s2572_s8 = inlined_call_operand.hbm [shape: bf16[3,128,128], index: 8, kind: input, shape index: {}]   ;;  %s2573_s9 = inlined_call_operand.hbm [shape: f32[32,128], index: 9, kind: output, shape index: {}]  }
   0x1   :  { %15 = vsyncpa [#allocation6], 0 }
   0x2   :  { %16 = vsyncpa [#allocation9], 0 }
   0x3   :  { %17 = vsyncpa [#allocation12], 0 }
   0x4   :  { %18 = vsyncpa [#allocation4], 0  ;;  %s2174_s30 = smov [#allocation5]   ;;  %s2175_s11 = smov [#allocation8]  }
   0x5   :  { %s36_s10 = sshll.u32 %s2174_s30, 4  ;;  %s66_s12 = sshll.u32 %s2175_s11, 4  ;;  %s37_s10 = int_to_ptr.vmem [resolvable:$true] %s36_s10  ;;  %s2235_s12 = int_to_ptr.vmem [resolvable:$true] %s66_s12 }
   0x6   :  { %s2010_s15 = scalar_lea.hbm %s2565_s1, 512 }
   0x7   :  { %p2011_p0 = scmp.ne.s32.totalorder %s2565_s1, %s2010_s15  ;;  %p2014_p1 = scmp.lt.u32.totalorder %s2010_s15, %s2565_s1 }
   0x9   :  { %p2016_p2 = pnand %p2014_p1, %p2011_p0 }
   0xb   :  { %2019 = shalt.err (!%p2016_p2)
}
   0xc   :  { %s2020_s20 = scalar_lea.vmem %s37_s10, 512  ;;  %p2025_p4 = scmp.lt.s32.totalorder %s37_s10, %s37_s10 }
   0xd   :  { %p2021_p3 = scmp.ne.s32.totalorder %s37_s10, %s2020_s20  ;;  %p2026_p5 = scmp.lt.s32.totalorder %s2020_s20, %s2020_s20 }
   0xf   :  { %p2027_p6 = por %p2026_p5, %p2025_p4 }
  0x11   :  { %p2028_p7 = pnand %p2027_p6, %p2021_p3 }
  0x13   :  { %2031 = shalt.err (!%p2028_p7)
}
  0x14   :  { %s2176_s21 = smov 128   ;;  %s2177_s22 = smov 8  }
  0x15   :  { %42 = dma.hbm_to_vmem [thread:$0]  %s2565_s1, 512, %s37_s10, [#allocation6], %s2176_s21, %s2176_s21, %s2177_s22  }
  0x16   :  { %s2032_s27 = scalar_lea.hbm %s2570_s6, 3072 }
  0x17   :  { %p2033_p8 = scmp.ne.s32.totalorder %s2570_s6, %s2032_s27  ;;  %p2036_p9 = scmp.lt.u32.totalorder %s2032_s27, %s2570_s6 }
  0x19   :  { %p2038_p10 = pnand %p2036_p9, %p2033_p8 }
  0x1b   :  { %2041 = shalt.err (!%p2038_p10)
}
  0x1c   :  { %s2042_s13 = scalar_lea.vmem %s2235_s12, 3072  ;;  %p2047_p12 = scmp.lt.s32.totalorder %s2235_s12, %s2235_s12 }
  0x1d   :  { %p2043_p11 = scmp.ne.s32.totalorder %s2235_s12, %s2042_s13  ;;  %p2048_p13 = scmp.lt.s32.totalorder %s2042_s13, %s2042_s13 }
  0x1f   :  { %p2049_p0 = por %p2048_p13, %p2047_p12 }
  0x21   :  { %p2050_p1 = pnand %p2049_p0, %p2043_p11 }
  0x23   :  { %2053 = shalt.err (!%p2050_p1)
}
  0x24   :  { %s2178_s1 = smov 64   ;;  %s2179_s10 = smov 4  }
  0x25   :  { %72 = dma.hbm_to_vmem [thread:$0]  %s2570_s6, 3072, %s2235_s12, [#allocation9], %s2178_s1, %s2178_s1, %s2179_s10  }
  0x26   :  { %s2180_s16 = smov [#allocation2]   ;;  %s2181_s18 = smov [#allocation7]  }
  0x27   :  { %s24_s17 = sshll.u32 %s2180_s16, 4  ;;  %s48_s19 = sshll.u32 %s2181_s18, 4  ;;  %s25_s17 = int_to_ptr.vmem [resolvable:$true] %s24_s17  ;;  %s2272_s19 = int_to_ptr.vmem [resolvable:$true] %s48_s19 }
  0x28   :  { %s2054_s24 = scalar_lea.hbm %s2564_s0, 512 }
  0x29   :  { %p2055_p2 = scmp.ne.s32.totalorder %s2564_s0, %s2054_s24  ;;  %p2058_p3 = scmp.lt.u32.totalorder %s2054_s24, %s2564_s0 }
  0x2b   :  { %p2060_p4 = pnand %p2058_p3, %p2055_p2 }
  0x2d   :  { %2063 = shalt.err (!%p2060_p4)
}
  0x2e   :  { %s2064_s6 = scalar_lea.vmem %s25_s17, 512  ;;  %p2069_p6 = scmp.lt.s32.totalorder %s25_s17, %s25_s17 }
  0x2f   :  { %p2065_p5 = scmp.ne.s32.totalorder %s25_s17, %s2064_s6  ;;  %p2070_p7 = scmp.lt.s32.totalorder %s2064_s6, %s2064_s6 }
  0x31   :  { %p2071_p8 = por %p2070_p7, %p2069_p6 }
  0x33   :  { %p2072_p9 = pnand %p2071_p8, %p2065_p5 }
  0x35   :  { %2075 = shalt.err (!%p2072_p9)
}
  0x36   :  { %30 = dma.hbm_to_vmem [thread:$0]  %s2564_s0, 512, %s25_s17, [#allocation3], %s2176_s21, %s2176_s21, %s2177_s22  }
  0x37   :  { %s2076_s13 = scalar_lea.hbm %s2566_s2, 512 }
  0x38   :  { %p2077_p10 = scmp.ne.s32.totalorder %s2566_s2, %s2076_s13  ;;  %p2080_p11 = scmp.lt.u32.totalorder %s2076_s13, %s2566_s2 }
  0x3a   :  { %p2082_p12 = pnand %p2080_p11, %p2077_p10 }
  0x3c   :  { %2085 = shalt.err (!%p2082_p12)
}
  0x3d   :  { %s2086_s20 = scalar_lea.vmem %s2272_s19, 512  ;;  %p2091_p0 = scmp.lt.s32.totalorder %s2272_s19, %s2272_s19 }
  0x3e   :  { %p2087_p13 = scmp.ne.s32.totalorder %s2272_s19, %s2086_s20  ;;  %p2092_p1 = scmp.lt.s32.totalorder %s2086_s20, %s2086_s20 }
  0x40   :  { %p2093_p2 = por %p2092_p1, %p2091_p0 }
  0x42   :  { %p2094_p3 = pnand %p2093_p2, %p2087_p13 }
  0x44   :  { %2097 = shalt.err (!%p2094_p3)
}
  0x45   :  { %54 = dma.hbm_to_vmem [thread:$0]  %s2566_s2, 512, %s2272_s19, [#allocation6], %s2176_s21, %s2176_s21, %s2177_s22  }
  0x46   :  { %s2182_s23 = smov [#allocation10]   ;;  %s2183_s25 = smov [#allocation11]  }
  0x47   :  { %s78_s24 = sshll.u32 %s2182_s23, 4  ;;  %s90_s26 = sshll.u32 %s2183_s25, 4  ;;  %s79_s24 = int_to_ptr.vmem [resolvable:$true] %s78_s24  ;;  %s2309_s26 = int_to_ptr.vmem [resolvable:$true] %s90_s26 }
  0x48   :  { %s2098_s6 = scalar_lea.hbm %s2571_s7, 3072 }
  0x49   :  { %p2099_p4 = scmp.ne.s32.totalorder %s2571_s7, %s2098_s6  ;;  %p2102_p5 = scmp.lt.u32.totalorder %s2098_s6, %s2571_s7 }
  0x4b   :  { %p2104_p6 = pnand %p2102_p5, %p2099_p4 }
  0x4d   :  { %2107 = shalt.err (!%p2104_p6)
}
  0x4e   :  { %s2108_s2 = scalar_lea.vmem %s79_s24, 3072  ;;  %p2113_p8 = scmp.lt.s32.totalorder %s79_s24, %s79_s24 }
  0x4f   :  { %p2109_p7 = scmp.ne.s32.totalorder %s79_s24, %s2108_s2  ;;  %p2114_p9 = scmp.lt.s32.totalorder %s2108_s2, %s2108_s2 }
  0x51   :  { %p2115_p10 = por %p2114_p9, %p2113_p8 }
  0x53   :  { %p2116_p11 = pnand %p2115_p10, %p2109_p7 }
  0x55   :  { %2119 = shalt.err (!%p2116_p11)
}
  0x56   :  { %84 = dma.hbm_to_vmem [thread:$0]  %s2571_s7, 3072, %s79_s24, [#allocation9], %s2178_s1, %s2178_s1, %s2179_s10  }
  0x57   :  { %s2120_s16 = scalar_lea.hbm %s2572_s8, 3072 }
  0x58   :  { %p2121_p12 = scmp.ne.s32.totalorder %s2572_s8, %s2120_s16  ;;  %p2124_p13 = scmp.lt.u32.totalorder %s2120_s16, %s2572_s8 }
  0x5a   :  { %p2126_p0 = pnand %p2124_p13, %p2121_p12 }
  0x5c   :  { %2129 = shalt.err (!%p2126_p0)
}
  0x5d   :  { %s2130_s23 = scalar_lea.vmem %s2309_s26, 3072  ;;  %p2135_p2 = scmp.lt.s32.totalorder %s2309_s26, %s2309_s26 }
  0x5e   :  { %p2131_p1 = scmp.ne.s32.totalorder %s2309_s26, %s2130_s23  ;;  %p2136_p3 = scmp.lt.s32.totalorder %s2130_s23, %s2130_s23 }
  0x60   :  { %p2137_p4 = por %p2136_p3, %p2135_p2 }
  0x62   :  { %p2138_p5 = pnand %p2137_p4, %p2131_p1 }
  0x64   :  { %2141 = shalt.err (!%p2138_p5)
}
  0x65   :  { %96 = dma.hbm_to_vmem [thread:$0]  %s2572_s8, 3072, %s2309_s26, [#allocation12], %s2178_s1, %s2178_s1, %s2179_s10  }
  0x66   :  { %2164 = dma.done.wait [#allocation3], 512  }
  0x67   :  { %2165 = vsyncadd [#allocation3], 4294966784 }
  0x68   :  { %2166 = dma.done.wait [#allocation6], 1024  }
  0x69   :  { %2167 = vsyncadd [#allocation6], 4294966272 }
  0x6a   :  { %2168 = dma.done.wait [#allocation9], 6144  }
  0x6b   :  { %2169 = vsyncadd [#allocation9], 4294961152 }
  0x6c   :  { %2170 = dma.done.wait [#allocation12], 3072  }
  0x6d   :  { %2171 = vsyncadd [#allocation12], 4294964224  ;;  %v1932_v0 = vld [vmem:[#allocation10] sm:$0xff]   ;;  %v1933_v1 = vld [vmem:[#allocation10 + $0x8] sm:$0xff]   ;;  %v163_v47 = vlaneseq  ;;  %vm210_vm0 = vcmask 1040384   ;;  %vm438_vm1 = vcmask 1046528  }
  0x6e   :  { %1737 = vmatprep.subr.bf16.mxu0 %v1932_v0  ;;  %v1934_v2 = vld [vmem:[#allocation10 + $0x10] sm:$0xff]   ;;  %v1935_v3 = vld [vmem:[#allocation10 + $0x18] sm:$0xff]   ;;  %v1940_v4 = vld [vmem:[#allocation8] sm:$0xff]   ;;  %s2184_s15 = smov [#allocation13]  }
  0x6f   :  { %1738 = vmatpush3.bf16.msra.mxu0 %v1932_v0  ;;  %v2346_v5 = vld [vmem:[#allocation2] sm:$0xff]  ;;  %v2348_v6 = vld [vmem:[#allocation2 + $0x8] sm:$0xff]  ;;  %v2350_v7 = vld [vmem:[#allocation2 + $0x10] sm:$0xff]  ;;  %1717 = vmatprep.subr.bf16.mxu1 %v1940_v4  ;;  %v164_v50 = vshrl.u32 %v163_v47, 7  ;;  %s1528_s16 = sshll.u32 %s2184_s15, 4  ;;  %s1529_s16 = int_to_ptr.vmem [resolvable:$true] %s1528_s16 }
  0x70   :  { %1739 = vmatprep.subr.bf16.mxu0 %v1933_v1  ;;  %v1936_v8 = vld [vmem:[#allocation10 + $0x20] sm:$0xff]   ;;  %v131_v9 = vadd.f32 %v2348_v6, %v2346_v5  ;;  %1718 = vmatpush3.bf16.msra.mxu1 %v1940_v4  ;;  %v2354_v10 = vld [vmem:[#allocation2 + $0x18] sm:$0xff]  ;;  %v1942_v12 = vld [vmem:[#allocation8 + $0x8] sm:$0xff]   ;;  %p2147_p7 = scmp.lt.s32.totalorder %s1529_s16, %s1529_s16 }
  0x71   :  { %1719 = vmatprep.subr.bf16.mxu1 %v1942_v12  ;;  %v1944_v14 = vld [vmem:[#allocation8 + $0x10] sm:$0xff]   ;;  %v1937_v15 = vld [vmem:[#allocation10 + $0x28] sm:$0xff]   ;;  %v1946_v17 = vld [vmem:[#allocation8 + $0x18] sm:$0xff]   ;;  %v2368_v53 = vsub.s32 0, %v164_v50 }
  0x72   :  { %v132_v11 = vadd.f32 %v131_v9, %v2350_v7  ;;  %v1938_v19 = vld [vmem:[#allocation10 + $0x30] sm:$0xff]   ;;  %v1948_v21 = vld [vmem:[#allocation8 + $0x20] sm:$0xff]   ;;  %v1939_v23 = vld [vmem:[#allocation10 + $0x38] sm:$0xff]  }
  0x73   :  { %1740 = vmatpush3.bf16.msra.mxu0 %v1933_v1  ;;  %v1950_v25 = vld [vmem:[#allocation8 + $0x28] sm:$0xff]   ;;  %v2358_v28 = vld [vmem:[#allocation11] sm:$0xff]   ;;  %v1952_v29 = vld [vmem:[#allocation8 + $0x30] sm:$0xff]  }
  0x74   :  { %1741 = vmatprep.subr.bf16.mxu0 %v1934_v2  ;;  %v133_v13 = vadd.f32 %v132_v11, %v2354_v10  ;;  %1720 = vmatpush3.bf16.msra.mxu1 %v1942_v12  ;;  %v1954_v34 = vld [vmem:[#allocation8 + $0x38] sm:$0xff]   ;;  %v128_v52 = vld [vmem:[%s2567_s3] sm:$0x1]  ;;  %v2404_v47 = vld [vmem:[#allocation7 + $0x10] sm:$0xff] }
  0x75   :  { %1721 = vmatprep.subr.bf16.mxu1 %v1944_v14  ;;  %v1543_v57 = vld [vmem:[%s2568_s4] ss:$0 sm:$0xff] }
  0x76   :  { %v134_v16 = vrot.slane %v133_v13, 4 }
  0x77   :  { %1742 = vmatpush3.bf16.msra.mxu0 %v1934_v2 }
  0x78   :  { %1743 = vmatprep.subr.bf16.mxu0 %v1935_v3  ;;  %v135_v18 = vadd.f32 %v134_v16, %v133_v13  ;;  %1722 = vmatpush3.bf16.msra.mxu1 %v1944_v14  ;;  %v2378_v14 = vld [vmem:[#allocation7] sm:$0xff] }
  0x79   :  { %1723 = vmatprep.subr.bf16.mxu1 %v1946_v17  ;;  %v2380_v16 = vld [vmem:[#allocation5] sm:$0xff] }
  0x7a   :  { %v136_v20 = vrot.slane %v135_v18, 2 }
  0x7b   :  { %1744 = vmatpush3.bf16.msra.mxu0 %v1935_v3 }
  0x7c   :  { %1745 = vmatprep.subr.bf16.mxu0 %v1936_v8  ;;  %v137_v22 = vadd.f32 %v136_v20, %v135_v18  ;;  %1724 = vmatpush3.bf16.msra.mxu1 %v1946_v17  ;;  %v2382_v17 = vld [vmem:[#allocation5 + $0x8] sm:$0xff] }
  0x7d   :  { %1725 = vmatprep.subr.bf16.mxu1 %v1948_v21 }
  0x7e   :  { %v138_v24 = vrot.slane %v137_v22, 1 }
  0x7f   :  { %1746 = vmatpush3.bf16.msra.mxu0 %v1936_v8 }
  0x80   :  { %1747 = vmatprep.subr.bf16.mxu0 %v1937_v15  ;;  %v139_v26 = vadd.f32 %v138_v24, %v137_v22  ;;  %1726 = vmatpush3.bf16.msra.mxu1 %v1948_v21  ;;  %v2385_v21 = vld [vmem:[#allocation5 + $0x10] sm:$0xff]  ;;  %v2387_v22 = vld [vmem:[#allocation5 + $0x18] sm:$0xff] }
  0x81   :  { %1727 = vmatprep.subr.bf16.mxu1 %v1950_v25 }
  0x82   :  { %v140_v27 = vmul.f32 0.03125, %v139_v26 }
  0x83   :  { %1748 = vmatpush3.bf16.msra.mxu0 %v1937_v15  ;;  %v1943_v15 = vld [vmem:[#allocation11 + $0x8] sm:$0xff]  }
  0x84   :  { %1749 = vmatprep.subr.bf16.mxu0 %v1938_v19  ;;  %v141_v30 = vsub.f32 %v2346_v5, %v140_v27  ;;  %v142_v31 = vsub.f32 %v2348_v6, %v140_v27  ;;  %v143_v32 = vsub.f32 %v2350_v7, %v140_v27  ;;  %v144_v33 = vsub.f32 %v2354_v10, %v140_v27 }
  0x85   :  { %1728 = vmatpush3.bf16.msra.mxu1 %v1950_v25 }
  0x86   :  { %v145_v35 = vmul.f32 %v141_v30, %v141_v30  ;;  %v146_v36 = vmul.f32 %v142_v31, %v142_v31  ;;  %v147_v37 = vmul.f32 %v143_v32, %v143_v32  ;;  %1729 = vmatprep.subr.bf16.mxu1 %v1952_v29  ;;  %v148_v38 = vmul.f32 %v144_v33, %v144_v33 }
  0x87   :  { %1750 = vmatpush3.bf16.msra.mxu0 %v1938_v19 }
  0x88   :  { %1751 = vmatprep.subr.bf16.mxu0 %v1939_v23  ;;  %v149_v39 = vadd.f32 %v146_v36, %v145_v35  ;;  %v1945_v35 = vld [vmem:[#allocation11 + $0x10] sm:$0xff]  }
  0x89   :  { %1730 = vmatpush3.bf16.msra.mxu1 %v1952_v29  ;;  %v2392_v29 = vld [vmem:[#allocation7 + $0x8] sm:$0xff] }
  0x8a   :  { %v150_v40 = vadd.f32 %v149_v39, %v147_v37  ;;  %1731 = vmatprep.subr.bf16.mxu1 %v1954_v34 }
  0x8b   :  { %1752 = vmatpush3.bf16.msra.mxu0 %v1939_v23 }
  0x8c   :  { %1757 = vmatprep.subr.bf16.mxu0 %v2358_v28  ;;  %v151_v41 = vadd.f32 %v150_v40, %v148_v38 }
  0x8d   :  { %1732 = vmatpush3.bf16.msra.mxu1 %v1954_v34 }
  0x8e   :  { %v152_v42 = vrot.slane %v151_v41, 4 }
  0x90   :  { %v153_v43 = vadd.f32 %v152_v42, %v151_v41  ;;  %v1947_v42 = vld [vmem:[#allocation11 + $0x18] sm:$0xff]  }
  0x92   :  { %v154_v44 = vrot.slane %v153_v43, 2 }
  0x94   :  { %v155_v45 = vadd.f32 %v154_v44, %v153_v43  ;;  %v1949_v43 = vld [vmem:[#allocation11 + $0x20] sm:$0xff]   ;;  %v1951_v44 = vld [vmem:[#allocation11 + $0x28] sm:$0xff]  }
  0x96   :  { %v156_v46 = vrot.slane %v155_v45, 1 }
  0x98   :  { %v157_v48 = vadd.f32 %v156_v46, %v155_v45  ;;  %v1953_v46 = vld [vmem:[#allocation11 + $0x30] sm:$0xff]  }
  0x9a   :  { %v158_v49 = vmul.f32 0.03125, %v157_v48  ;;  %v2406_v48 = vld [vmem:[#allocation7 + $0x18] sm:$0xff] }
  0x9c   :  { %v159_v51 = vadd.f32 1e-05, %v158_v49 }
  0x9e   :  { %2004 = vrsqrt.f32 %v159_v51  ;;  %v1955_v51 = vld [vmem:[#allocation11 + $0x38] sm:$0xff]  }
  0xa8   :  { %v2005_v54 = vpop.eup %2004 }
  0xa9   :  { %v161_v55 = vmul.f32 %v2005_v54, %v128_v52 }
  0xab   :  { %v166_v56 = vrot.slane %v161_v55, %v2368_v53 }
  0xad   :  { %v168_v58 = vmul.f32 %v166_v56, %v141_v30  ;;  %v169_v59 = vmul.f32 %v166_v56, %v142_v31  ;;  %v170_v60 = vmul.f32 %v166_v56, %v143_v32  ;;  %v171_v61 = vmul.f32 %v166_v56, %v144_v33  ;;  %v1956_v56 = vld [vmem:[#allocation8 + $0x40] sm:$0xff]  }
  0xae   :  { %1777 = vmatprep.subr.bf16.mxu1 %v1956_v56 }
  0xaf   :  { %v178_v62 = vadd.f32 %v1543_v57, %v168_v58  ;;  %v179_v63 = vadd.f32 %v1543_v57, %v169_v59  ;;  %v180_v0 = vadd.f32 %v1543_v57, %v170_v60  ;;  %v181_v1 = vadd.f32 %v1543_v57, %v171_v61  ;;  %v1957_v57 = vld [vmem:[#allocation8 + $0x48] sm:$0xff]   ;;  %v1958_v58 = vld [vmem:[#allocation8 + $0x50] sm:$0xff]   ;;  %v1959_v59 = vld [vmem:[#allocation8 + $0x58] sm:$0xff]  }
  0xb0   :  { %v1960_v60 = vld [vmem:[#allocation8 + $0x60] sm:$0xff]   ;;  %v1961_v61 = vld [vmem:[#allocation8 + $0x68] sm:$0xff]  }
  0xb1   :  { %v2374_v2 = vmax.f32 %v178_v62, 0.0  ;;  %v183_v3 = vmax.f32 %v179_v63, 0.0  ;;  %v184_v4 = vmax.f32 %v180_v0, 0.0  ;;  %v185_v8 = vmax.f32 %v181_v1, 0.0  ;;  %v1962_v62 = vld [vmem:[#allocation8 + $0x70] sm:$0xff]   ;;  %v1963_v63 = vld [vmem:[#allocation8 + $0x78] sm:$0xff]  }
  0xb2   :  { %v2412_v0 = vld [vmem:[#allocation10 + $0x40] sm:$0xff]  }
  0xb3   :  { %v186_v9 = vpack.c.bf16 %v183_v3, %v2374_v2  ;;  %v439_v11 = vrot.slane %v2374_v2, 1  ;;  %v440_v12 = vrot.slane %v183_v3, 1  ;;  %v187_v13 = vpack.c.bf16 %v185_v8, %v184_v4 }
  0xb4   :  { %v205_v18 = vrot.slane %v185_v8, 7  ;;  %v211_v19 = vrot.slane %v2374_v2, 7  ;;  %v212_v20 = vrot.slane %v183_v3, 7  ;;  %v214_v23 = vrot.slane %v184_v4, 7 }
  0xb5   :  { %1753 = vmatprep.mubr.bf16.mxu0 %v186_v9  ;;  %v441_v24 = vsel %vm438_vm1, %v439_v11, %v440_v12  ;;  %v442_v25 = vrot.slane %v184_v4, 1  ;;  %v444_v45 = vrot.slane %v185_v8, 1 }
  0xb6   :  { %1754 = vmatmul.mubr.bf16.vlgmr.msra.gmra.mrb[0].mxu0 %v187_v13  ;;  %v213_v26 = vsel %vm210_vm0, %v211_v19, %v212_v20  ;;  %v221_v27 = vsel %vm210_vm0, %v205_v18, %v211_v19  ;;  %v452_v30 = vmul.f32 %v441_v24, %v2378_v14  ;;  %v215_v33 = vsel %vm210_vm0, %v212_v20, %v214_v23 }
  0xb7   :  { %1758 = vmatpush3.bf16.msra.mxu0 %v2358_v28  ;;  %v222_v31 = vmul.f32 %v221_v27, %v2380_v16  ;;  %v223_v32 = vmul.f32 %v213_v26, %v2382_v17  ;;  %v216_v34 = vsel %vm210_vm0, %v214_v23, %v205_v18  ;;  %v224_v36 = vmul.f32 %v215_v33, %v2385_v21  ;;  %v1568_v23 = vld [vmem:[%s2569_s5] ss:$0 sm:$0xff] }
  0xb8   :  { %1759 = vmatprep.subr.bf16.mxu0 %v1943_v15  ;;  %v225_v37 = vmul.f32 %v216_v34, %v2387_v22  ;;  %v443_v38 = vsel %vm438_vm1, %v440_v12, %v442_v25  ;;  %v445_v49 = vsel %vm438_vm1, %v442_v25, %v444_v45  ;;  %v451_v50 = vsel %vm438_vm1, %v444_v45, %v439_v11 }
  0xb9   :  { %v226_v39 = vpack.c.bf16 %v223_v32, %v222_v31  ;;  %v453_v40 = vmul.f32 %v443_v38, %v2392_v29  ;;  %v454_v52 = vmul.f32 %v445_v49, %v2404_v47  ;;  %v455_v54 = vmul.f32 %v451_v50, %v2406_v48 }
  0xba   :  { %v227_v28 = vpack.c.bf16 %v225_v37, %v224_v36 }
  0xbb   :  { %1760 = vmatpush3.bf16.msra.mxu0 %v1943_v15  ;;  %1733 = vmatprep.mubr.bf16.mxu1 %v226_v39  ;;  %v456_v41 = vpack.c.bf16 %v453_v40, %v452_v30  ;;  %v457_v55 = vpack.c.bf16 %v455_v54, %v454_v52 }
  0xbc   :  { %1761 = vmatprep.subr.bf16.mxu0 %v1945_v35  ;;  %1734 = vmatmul.mubr.bf16.vlgmr.msra.gmra.mrb[0].mxu1 %v227_v28 }
  0xbd   :  { %1773 = vmatprep.mubr.bf16.mxu0 %v456_v41  ;;  %1778 = vmatpush3.bf16.msra.mxu1 %v1956_v56 }
  0xbe   :  { %1779 = vmatprep.subr.bf16.mxu1 %v1957_v57 }
  0xbf   :  { %1762 = vmatpush3.bf16.msra.mxu0 %v1945_v35 }
  0xc0   :  { %1763 = vmatprep.subr.bf16.mxu0 %v1947_v42 }
  0xc1   :  { %1780 = vmatpush3.bf16.msra.mxu1 %v1957_v57 }
  0xc2   :  { %1781 = vmatprep.subr.bf16.mxu1 %v1958_v58 }
  0xc3   :  { %1764 = vmatpush3.bf16.msra.mxu0 %v1947_v42 }
  0xc4   :  { %1765 = vmatprep.subr.bf16.mxu0 %v1949_v43 }
  0xc5   :  { %1782 = vmatpush3.bf16.msra.mxu1 %v1958_v58 }
  0xc6   :  { %1783 = vmatprep.subr.bf16.mxu1 %v1959_v59 }
  0xc7   :  { %1766 = vmatpush3.bf16.msra.mxu0 %v1949_v43 }
  0xc8   :  { %1767 = vmatprep.subr.bf16.mxu0 %v1951_v44 }
  0xc9   :  { %1784 = vmatpush3.bf16.msra.mxu1 %v1959_v59 }
  0xca   :  { %1785 = vmatprep.subr.bf16.mxu1 %v1960_v60 }
  0xcb   :  { %1768 = vmatpush3.bf16.msra.mxu0 %v1951_v44 }
  0xcc   :  { %1769 = vmatprep.subr.bf16.mxu0 %v1953_v46 }
  0xcd   :  { %1786 = vmatpush3.bf16.msra.mxu1 %v1960_v60  ;;  %v1569_v60 = vld [vmem:[%s2567_s3 + $0x1] sm:$0x1] }
  0xce   :  { %1787 = vmatprep.subr.bf16.mxu1 %v1961_v61 }
  0xcf   :  { %1770 = vmatpush3.bf16.msra.mxu0 %v1953_v46 }
  0xd0   :  { %1771 = vmatprep.subr.bf16.mxu0 %v1955_v51 }
  0xd1   :  { %1788 = vmatpush3.bf16.msra.mxu1 %v1961_v61 }
  0xd2   :  { %1789 = vmatprep.subr.bf16.mxu1 %v1962_v62 }
  0xd3   :  { %1772 = vmatpush3.bf16.msra.mxu0 %v1955_v51 }
  0xd5   :  { %1790 = vmatpush3.bf16.msra.mxu1 %v1962_v62 }
  0xd6   :  { %1774 = vmatmul.mubr.bf16.vlgmr.msra.gmra.mrb[0].mxu0 %v457_v55  ;;  %1791 = vmatprep.subr.bf16.mxu1 %v1963_v63 }
  0xd9   :  { %1792 = vmatpush3.bf16.msra.mxu1 %v1963_v63 }
  0xda   :  { %1797 = vmatprep.subr.bf16.mxu1 %v2412_v0 }
 0x18f   :  { %v1735_v1 = vpop.f32.mrb[0].mxu1 }
 0x190   :  { %v326_v2 = vpop.f32.mrb[1].mxu1 }
 0x191   :  { %v1736_v3 = vpop.f32.mrb[2].mxu1 }
 0x192   :  { %v329_v4 = vpop.f32.mrb[3].mxu1 }
 0x1a9   :  { %v1775_v8 = vpop.f32.mrb[0].mxu0 }
 0x1aa   :  { %v1897_v9 = vadd.f32 %v1775_v8, %v1735_v1  ;;  %v556_v11 = vpop.f32.mrb[1].mxu0  ;;  %v1572_v1 = vld [vmem:[%s2568_s4 + $0x1] ss:$0 sm:$0xff] }
 0x1ab   :  { %v1898_v12 = vadd.f32 %v556_v11, %v326_v2  ;;  %v1776_v13 = vpop.f32.mrb[2].mxu0 }
 0x1ac   :  { %v1899_v15 = vadd.f32 %v1776_v13, %v1736_v3  ;;  %v559_v18 = vpop.f32.mrb[3].mxu0  ;;  %v577_v24 = vadd.f32 %v1897_v9, %v2350_v7 }
 0x1ad   :  { %v575_v19 = vadd.f32 %v1898_v12, %v2346_v5  ;;  %v1900_v20 = vadd.f32 %v559_v18, %v329_v4 }
 0x1ae   :  { %v578_v27 = vadd.f32 %v1899_v15, %v2354_v10  ;;  %v2426_v31 = vadd.f32 %v1568_v23, %v577_v24 }
 0x1af   :  { %v576_v25 = vadd.f32 %v1900_v20, %v2348_v6  ;;  %v2421_v26 = vadd.f32 %v1568_v23, %v575_v19 }
 0x1b0   :  { %v2430_v32 = vadd.f32 %v1568_v23, %v578_v27 }
 0x1b1   :  { %v2424_v30 = vadd.f32 %v1568_v23, %v576_v25 }
 0x1b3   :  { %v595_v5 = vadd.f32 %v2424_v30, %v2421_v26 }
 0x1b5   :  { %v596_v33 = vadd.f32 %v595_v5, %v2426_v31 }
 0x1b7   :  { %v597_v34 = vadd.f32 %v596_v33, %v2430_v32 }
 0x1b9   :  { %v598_v7 = vrot.slane %v597_v34, 4 }
 0x1bb   :  { %v599_v35 = vadd.f32 %v598_v7, %v597_v34 }
 0x1bd   :  { %v600_v6 = vrot.slane %v599_v35, 2 }
 0x1bf   :  { %v601_v36 = vadd.f32 %v600_v6, %v599_v35 }
 0x1c1   :  { %v602_v37 = vrot.slane %v601_v36, 1 }
 0x1c3   :  { %v603_v38 = vadd.f32 %v602_v37, %v601_v36 }
 0x1c5   :  { %v604_v10 = vmul.f32 0.03125, %v603_v38 }
 0x1c7   :  { %v605_v39 = vsub.f32 %v2421_v26, %v604_v10  ;;  %v606_v40 = vsub.f32 %v2424_v30, %v604_v10  ;;  %v607_v28 = vsub.f32 %v2426_v31, %v604_v10  ;;  %v608_v41 = vsub.f32 %v2430_v32, %v604_v10 }
 0x1c9   :  { %v609_v42 = vmul.f32 %v605_v39, %v605_v39  ;;  %v610_v43 = vmul.f32 %v606_v40, %v606_v40  ;;  %v611_v44 = vmul.f32 %v607_v28, %v607_v28  ;;  %v612_v46 = vmul.f32 %v608_v41, %v608_v41 }
 0x1cb   :  { %v613_v45 = vadd.f32 %v610_v43, %v609_v42  ;;  %v1968_v42 = vld [vmem:[#allocation10 + $0x60] sm:$0xff]   ;;  %v1969_v43 = vld [vmem:[#allocation10 + $0x68] sm:$0xff]  }
 0x1cd   :  { %v614_v49 = vadd.f32 %v613_v45, %v611_v44  ;;  %v1970_v44 = vld [vmem:[#allocation10 + $0x70] sm:$0xff]  }
 0x1cf   :  { %v615_v50 = vadd.f32 %v614_v49, %v612_v46  ;;  %v1971_v49 = vld [vmem:[#allocation10 + $0x78] sm:$0xff]  }
 0x1d1   :  { %v616_v51 = vrot.slane %v615_v50, 4 }
 0x1d3   :  { %v617_v52 = vadd.f32 %v616_v51, %v615_v50 }
 0x1d5   :  { %v618_v54 = vrot.slane %v617_v52, 2 }
 0x1d7   :  { %v619_v55 = vadd.f32 %v618_v54, %v617_v52  ;;  %v1972_v52 = vld [vmem:[#allocation11 + $0x40] sm:$0xff]  }
 0x1d9   :  { %v620_v56 = vrot.slane %v619_v55, 1 }
 0x1db   :  { %v621_v57 = vadd.f32 %v620_v56, %v619_v55 }
 0x1dd   :  { %v622_v58 = vmul.f32 0.03125, %v621_v57  ;;  %v1973_v57 = vld [vmem:[#allocation11 + $0x48] sm:$0xff]  }
 0x1df   :  { %v623_v59 = vadd.f32 1e-05, %v622_v58 }
 0x1e1   :  { %2006 = vrsqrt.f32 %v623_v59  ;;  %v1974_v59 = vld [vmem:[#allocation11 + $0x50] sm:$0xff]  }
 0x1eb   :  { %v2007_v61 = vpop.eup %2006 }
 0x1ec   :  { %v625_v62 = vmul.f32 %v2007_v61, %v1569_v60  ;;  %v1975_v60 = vld [vmem:[#allocation11 + $0x58] sm:$0xff]   ;;  %v1976_v61 = vld [vmem:[#allocation11 + $0x60] sm:$0xff]  }
 0x1ee   :  { %v630_v63 = vrot.slane %v625_v62, %v2368_v53  ;;  %v1977_v62 = vld [vmem:[#allocation11 + $0x68] sm:$0xff]  }
 0x1f0   :  { %v633_v2 = vmul.f32 %v630_v63, %v606_v40  ;;  %v634_v3 = vmul.f32 %v630_v63, %v607_v28  ;;  %v632_v4 = vmul.f32 %v630_v63, %v605_v39  ;;  %v635_v8 = vmul.f32 %v630_v63, %v608_v41  ;;  %v1965_v39 = vld [vmem:[#allocation10 + $0x48] sm:$0xff]   ;;  %v1966_v28 = vld [vmem:[#allocation10 + $0x50] sm:$0xff]   ;;  %v1967_v41 = vld [vmem:[#allocation10 + $0x58] sm:$0xff]  }
 0x1f1   :  { %v1978_v63 = vld [vmem:[#allocation11 + $0x70] sm:$0xff]  }
 0x1f2   :  { %v643_v9 = vadd.f32 %v1572_v1, %v633_v2  ;;  %v642_v11 = vadd.f32 %v1572_v1, %v632_v4  ;;  %v645_v12 = vadd.f32 %v1572_v1, %v635_v8  ;;  %v644_v13 = vadd.f32 %v1572_v1, %v634_v3  ;;  %v1979_v2 = vld [vmem:[#allocation11 + $0x78] sm:$0xff]  }
 0x1f4   :  { %v647_v15 = vmax.f32 %v643_v9, 0.0  ;;  %v2445_v18 = vmax.f32 %v642_v11, 0.0  ;;  %v2447_v19 = vmax.f32 %v645_v12, 0.0  ;;  %v2449_v20 = vmax.f32 %v644_v13, 0.0  ;;  %v1980_v12 = vld [vmem:[#allocation8 + $0x80] sm:$0xff]   ;;  %v1981_v13 = vld [vmem:[#allocation8 + $0x88] sm:$0xff]  }
 0x1f5   :  { %1837 = vmatprep.subr.bf16.mxu0 %v1980_v12 }
 0x1f6   :  { %v670_v23 = vrot.slane %v2447_v19, 7  ;;  %v675_v24 = vrot.slane %v2445_v18, 7  ;;  %v676_v25 = vrot.slane %v647_v15, 7  ;;  %v678_v27 = vrot.slane %v2449_v20, 7  ;;  %1838 = vmatpush3.bf16.msra.mxu0 %v1980_v12  ;;  %v1601_v12 = vld [vmem:[%s2568_s4 + $0x2] ss:$0 sm:$0xff] }
 0x1f7   :  { %v650_v40 = vpack.c.bf16 %v647_v15, %v2445_v18  ;;  %v903_v45 = vrot.slane %v2445_v18, 1  ;;  %v904_v46 = vrot.slane %v647_v15, 1  ;;  %v651_v56 = vpack.c.bf16 %v2447_v19, %v2449_v20  ;;  %1839 = vmatprep.subr.bf16.mxu0 %v1981_v13  ;;  %v1982_v15 = vld [vmem:[#allocation8 + $0x90] sm:$0xff]   ;;  %v1983_v18 = vld [vmem:[#allocation8 + $0x98] sm:$0xff]  }
 0x1f8   :  { %v677_v5 = vsel %vm210_vm0, %v675_v24, %v676_v25  ;;  %v685_v33 = vsel %vm210_vm0, %v670_v23, %v675_v24  ;;  %v679_v34 = vsel %vm210_vm0, %v676_v25, %v678_v27  ;;  %v680_v7 = vsel %vm210_vm0, %v678_v27, %v670_v23  ;;  %v1986_v23 = vld [vmem:[#allocation8 + $0xb0] sm:$0xff]   ;;  %v1987_v24 = vld [vmem:[#allocation8 + $0xb8] sm:$0xff]   ;;  %v2477_v25 = vld [vmem:[#allocation10 + $0x80] sm:$0xff]  }
 0x1f9   :  { %v686_v35 = vmul.f32 %v685_v33, %v2380_v16  ;;  %v687_v6 = vmul.f32 %v677_v5, %v2382_v17  ;;  %v688_v36 = vmul.f32 %v679_v34, %v2385_v21  ;;  %v689_v37 = vmul.f32 %v680_v7, %v2387_v22  ;;  %v1597_v7 = vld [vmem:[%s2569_s5 + $0x1] ss:$0 sm:$0xff] }
 0x1fa   :  { %v905_v50 = vsel %vm438_vm1, %v903_v45, %v904_v46  ;;  %v908_v1 = vrot.slane %v2447_v19, 1  ;;  %1840 = vmatpush3.bf16.msra.mxu0 %v1981_v13  ;;  %v1984_v19 = vld [vmem:[#allocation8 + $0xa0] sm:$0xff]  }
 0x1fb   :  { %v690_v38 = vpack.c.bf16 %v687_v6, %v686_v35  ;;  %v691_v10 = vpack.c.bf16 %v689_v37, %v688_v36  ;;  %v916_v54 = vmul.f32 %v905_v50, %v2378_v14  ;;  %1841 = vmatprep.subr.bf16.mxu0 %v1982_v15 }
 0x1fc   :  { %v915_v4 = vsel %vm438_vm1, %v908_v1, %v903_v45 }
 0x1fd   :  { %1793 = vmatprep.mubr.bf16.mxu1 %v690_v38  ;;  %v919_v9 = vmul.f32 %v915_v4, %v2406_v48  ;;  %v1598_v4 = vld [vmem:[%s2567_s3 + $0x2] sm:$0x1] }
 0x1fe   :  { %1794 = vmatmul.mubr.bf16.vlgmr.msra.gmra.mrb[4].mxu1 %v691_v10  ;;  %1842 = vmatpush3.bf16.msra.mxu0 %v1982_v15 }
 0x1ff   :  { %1798 = vmatpush3.bf16.msra.mxu1 %v2412_v0  ;;  %1813 = vmatprep.mubr.bf16.mxu1 %v650_v40  ;;  %v906_v0 = vrot.slane %v2449_v20, 1  ;;  %v1985_v20 = vld [vmem:[#allocation8 + $0xa8] sm:$0xff]  }
 0x200   :  { %1799 = vmatprep.subr.bf16.mxu1 %v1965_v39  ;;  %1843 = vmatprep.subr.bf16.mxu0 %v1983_v18 }
 0x201   :  { %v907_v51 = vsel %vm438_vm1, %v904_v46, %v906_v0  ;;  %v909_v3 = vsel %vm438_vm1, %v906_v0, %v908_v1 }
 0x202   :  { %v917_v55 = vmul.f32 %v907_v51, %v2392_v29  ;;  %v918_v8 = vmul.f32 %v909_v3, %v2404_v47  ;;  %1844 = vmatpush3.bf16.msra.mxu0 %v1983_v18 }
 0x203   :  { %1800 = vmatpush3.bf16.msra.mxu1 %v1965_v39  ;;  %1845 = vmatprep.subr.bf16.mxu0 %v1984_v19 }
 0x204   :  { %1801 = vmatprep.subr.bf16.mxu1 %v1966_v28  ;;  %v920_v58 = vpack.c.bf16 %v917_v55, %v916_v54  ;;  %v921_v11 = vpack.c.bf16 %v919_v9, %v918_v8 }
 0x206   :  { %1846 = vmatpush3.bf16.msra.mxu0 %v1984_v19 }
 0x207   :  { %1802 = vmatpush3.bf16.msra.mxu1 %v1966_v28  ;;  %1847 = vmatprep.subr.bf16.mxu0 %v1985_v20 }
 0x208   :  { %1803 = vmatprep.subr.bf16.mxu1 %v1967_v41 }
 0x20a   :  { %1848 = vmatpush3.bf16.msra.mxu0 %v1985_v20 }
 0x20b   :  { %1804 = vmatpush3.bf16.msra.mxu1 %v1967_v41  ;;  %1849 = vmatprep.subr.bf16.mxu0 %v1986_v23 }
 0x20c   :  { %1805 = vmatprep.subr.bf16.mxu1 %v1968_v42 }
 0x20e   :  { %1850 = vmatpush3.bf16.msra.mxu0 %v1986_v23 }
 0x20f   :  { %1806 = vmatpush3.bf16.msra.mxu1 %v1968_v42  ;;  %1851 = vmatprep.subr.bf16.mxu0 %v1987_v24 }
 0x210   :  { %1807 = vmatprep.subr.bf16.mxu1 %v1969_v43 }
 0x212   :  { %1852 = vmatpush3.bf16.msra.mxu0 %v1987_v24 }
 0x213   :  { %1808 = vmatpush3.bf16.msra.mxu1 %v1969_v43  ;;  %1857 = vmatprep.subr.bf16.mxu0 %v2477_v25 }
 0x214   :  { %1809 = vmatprep.subr.bf16.mxu1 %v1970_v44 }
 0x217   :  { %1810 = vmatpush3.bf16.msra.mxu1 %v1970_v44 }
 0x218   :  { %1811 = vmatprep.subr.bf16.mxu1 %v1971_v49 }
 0x21b   :  { %1812 = vmatpush3.bf16.msra.mxu1 %v1971_v49 }
 0x21c   :  { %1817 = vmatprep.subr.bf16.mxu1 %v1972_v52 }
 0x21e   :  { %1814 = vmatmul.mubr.bf16.vlgmr.msra.gmra.mrb[4].mxu1 %v651_v56 }
 0x21f   :  { %1818 = vmatpush3.bf16.msra.mxu1 %v1972_v52  ;;  %1833 = vmatprep.mubr.bf16.mxu1 %v920_v58 }
 0x220   :  { %1819 = vmatprep.subr.bf16.mxu1 %v1973_v57 }
 0x223   :  { %1820 = vmatpush3.bf16.msra.mxu1 %v1973_v57 }
 0x224   :  { %1821 = vmatprep.subr.bf16.mxu1 %v1974_v59 }
 0x227   :  { %1822 = vmatpush3.bf16.msra.mxu1 %v1974_v59 }
 0x228   :  { %1823 = vmatprep.subr.bf16.mxu1 %v1975_v60 }
 0x22b   :  { %1824 = vmatpush3.bf16.msra.mxu1 %v1975_v60 }
 0x22c   :  { %1825 = vmatprep.subr.bf16.mxu1 %v1976_v61 }
 0x22f   :  { %1826 = vmatpush3.bf16.msra.mxu1 %v1976_v61 }
 0x230   :  { %1827 = vmatprep.subr.bf16.mxu1 %v1977_v62 }
 0x233   :  { %1828 = vmatpush3.bf16.msra.mxu1 %v1977_v62 }
 0x234   :  { %1829 = vmatprep.subr.bf16.mxu1 %v1978_v63 }
 0x237   :  { %1830 = vmatpush3.bf16.msra.mxu1 %v1978_v63 }
 0x238   :  { %1831 = vmatprep.subr.bf16.mxu1 %v1979_v2 }
 0x23b   :  { %1832 = vmatpush3.bf16.msra.mxu1 %v1979_v2 }
 0x23e   :  { %1834 = vmatmul.mubr.bf16.vlgmr.msra.gmra.mrb[4].mxu1 %v921_v11 }
 0x311   :  { %v1835_v27 = vpop.f32.mrb[4].mxu1 }
 0x312   :  { %v1021_v5 = vpop.f32.mrb[5].mxu1  ;;  %v1042_v6 = vadd.f32 %v1835_v27, %v2426_v31 }
 0x313   :  { %v1040_v33 = vadd.f32 %v1021_v5, %v2421_v26  ;;  %v1836_v34 = vpop.f32.mrb[6].mxu1 }
 0x314   :  { %v1024_v35 = vpop.f32.mrb[7].mxu1  ;;  %v1043_v38 = vadd.f32 %v1836_v34, %v2430_v32  ;;  %v2491_v39 = vadd.f32 %v1597_v7, %v1042_v6 }
 0x315   :  { %v1041_v36 = vadd.f32 %v1024_v35, %v2424_v30  ;;  %v2486_v37 = vadd.f32 %v1597_v7, %v1040_v33 }
 0x316   :  { %v2495_v40 = vadd.f32 %v1597_v7, %v1043_v38 }
 0x317   :  { %v2489_v10 = vadd.f32 %v1597_v7, %v1041_v36 }
 0x319   :  { %v1060_v26 = vadd.f32 %v2489_v10, %v2486_v37 }
 0x31b   :  { %v1061_v28 = vadd.f32 %v1060_v26, %v2491_v39 }
 0x31d   :  { %v1062_v41 = vadd.f32 %v1061_v28, %v2495_v40 }
 0x31f   :  { %v1063_v31 = vrot.slane %v1062_v41, 4 }
 0x321   :  { %v1064_v42 = vadd.f32 %v1063_v31, %v1062_v41 }
 0x323   :  { %v1065_v30 = vrot.slane %v1064_v42, 2 }
 0x325   :  { %v1066_v43 = vadd.f32 %v1065_v30, %v1064_v42 }
 0x327   :  { %v1067_v44 = vrot.slane %v1066_v43, 1 }
 0x329   :  { %v1068_v45 = vadd.f32 %v1067_v44, %v1066_v43 }
 0x32b   :  { %v1069_v32 = vmul.f32 0.03125, %v1068_v45 }
 0x32d   :  { %v1070_v46 = vsub.f32 %v2486_v37, %v1069_v32  ;;  %v1071_v0 = vsub.f32 %v2489_v10, %v1069_v32  ;;  %v1072_v49 = vsub.f32 %v2491_v39, %v1069_v32  ;;  %v1073_v50 = vsub.f32 %v2495_v40, %v1069_v32  ;;  %v1989_v32 = vld [vmem:[#allocation10 + $0x88] sm:$0xff]  }
 0x32f   :  { %v1074_v51 = vmul.f32 %v1070_v46, %v1070_v46  ;;  %v1075_v52 = vmul.f32 %v1071_v0, %v1071_v0  ;;  %v1076_v54 = vmul.f32 %v1072_v49, %v1072_v49  ;;  %v1077_v56 = vmul.f32 %v1073_v50, %v1073_v50 }
 0x331   :  { %v1078_v55 = vadd.f32 %v1075_v52, %v1074_v51  ;;  %v1995_v51 = vld [vmem:[#allocation10 + $0xb8] sm:$0xff]  }
 0x333   :  { %v1079_v57 = vadd.f32 %v1078_v55, %v1076_v54  ;;  %v1996_v55 = vld [vmem:[#allocation11 + $0x80] sm:$0xff]  }
 0x335   :  { %v1080_v58 = vadd.f32 %v1079_v57, %v1077_v56 }
 0x337   :  { %v1081_v59 = vrot.slane %v1080_v58, 4 }
 0x339   :  { %v1082_v60 = vadd.f32 %v1081_v59, %v1080_v58  ;;  %v1997_v59 = vld [vmem:[#allocation11 + $0x88] sm:$0xff]  }
 0x33b   :  { %v1083_v61 = vrot.slane %v1082_v60, 2 }
 0x33d   :  { %v1084_v62 = vadd.f32 %v1083_v61, %v1082_v60  ;;  %v1998_v61 = vld [vmem:[#allocation11 + $0x90] sm:$0xff]  }
 0x33f   :  { %v1085_v63 = vrot.slane %v1084_v62, 1 }
 0x341   :  { %v1086_v1 = vadd.f32 %v1085_v63, %v1084_v62  ;;  %v1999_v62 = vld [vmem:[#allocation11 + $0x98] sm:$0xff]   ;;  %v2002_v63 = vld [vmem:[#allocation11 + $0xb0] sm:$0xff]  }
 0x343   :  { %v1087_v2 = vmul.f32 0.03125, %v1086_v1 }
 0x345   :  { %v1088_v3 = vadd.f32 1e-05, %v1087_v2  ;;  %v2003_v2 = vld [vmem:[#allocation11 + $0xb8] sm:$0xff]  }
 0x347   :  { %2008 = vrsqrt.f32 %v1088_v3 }
 0x351   :  { %v2009_v8 = vpop.eup %2008 }
 0x352   :  { %v1090_v9 = vmul.f32 %v2009_v8, %v1598_v4 }
 0x354   :  { %v1095_v11 = vrot.slane %v1090_v9, %v2368_v53 }
 0x356   :  { %v1097_v13 = vmul.f32 %v1095_v11, %v1070_v46  ;;  %v1098_v15 = vmul.f32 %v1095_v11, %v1071_v0  ;;  %v1099_v18 = vmul.f32 %v1095_v11, %v1072_v49  ;;  %v1100_v19 = vmul.f32 %v1095_v11, %v1073_v50  ;;  %v1990_v0 = vld [vmem:[#allocation10 + $0x90] sm:$0xff]  }
 0x358   :  { %v1108_v20 = vadd.f32 %v1601_v12, %v1098_v15  ;;  %v1109_v23 = vadd.f32 %v1601_v12, %v1099_v18  ;;  %v1107_v24 = vadd.f32 %v1601_v12, %v1097_v13  ;;  %v1110_v27 = vadd.f32 %v1601_v12, %v1100_v19  ;;  %v1626_v12 = vld [vmem:[%s2569_s5 + $0x2] ss:$0 sm:$0xff]  ;;  %s2142_s5 = scalar_lea.vmem %s1529_s16, 512 }
 0x359   :  { %p2143_p6 = scmp.ne.s32.totalorder %s1529_s16, %s2142_s5  ;;  %p2148_p8 = scmp.lt.s32.totalorder %s2142_s5, %s2142_s5 }
 0x35a   :  { %v1112_v5 = vmax.f32 %v1108_v20, 0.0  ;;  %v2510_v33 = vmax.f32 %v1107_v24, 0.0  ;;  %v2512_v34 = vmax.f32 %v1110_v27, 0.0  ;;  %v2514_v7 = vmax.f32 %v1109_v23, 0.0 }
 0x35b   :  { %p2149_p9 = por %p2148_p8, %p2147_p7 }
 0x35c   :  { %v1135_v53 = vrot.slane %v2512_v34, 7  ;;  %v1140_v35 = vrot.slane %v2510_v33, 7  ;;  %v1141_v6 = vrot.slane %v1112_v5, 7  ;;  %v1143_v36 = vrot.slane %v2514_v7, 7 }
 0x35d   :  { %v1115_v46 = vpack.c.bf16 %v1112_v5, %v2510_v33  ;;  %v1368_v49 = vrot.slane %v2510_v33, 1  ;;  %v1369_v50 = vrot.slane %v1112_v5, 1  ;;  %v1116_v58 = vpack.c.bf16 %v2512_v34, %v2514_v7  ;;  %p2150_p10 = pnand %p2149_p9, %p2143_p6 }
 0x35e   :  { %v1142_v38 = vsel %vm210_vm0, %v1140_v35, %v1141_v6  ;;  %v1150_v26 = vsel %vm210_vm0, %v1135_v53, %v1140_v35  ;;  %v1144_v28 = vsel %vm210_vm0, %v1141_v6, %v1143_v36  ;;  %v1145_v41 = vsel %vm210_vm0, %v1143_v36, %v1135_v53 }
 0x35f   :  { %v1151_v31 = vmul.f32 %v1150_v26, %v2380_v16  ;;  %v1152_v42 = vmul.f32 %v1142_v38, %v2382_v17  ;;  %v1153_v30 = vmul.f32 %v1144_v28, %v2385_v21  ;;  %v1154_v43 = vmul.f32 %v1145_v41, %v2387_v22  ;;  %v1991_v16 = vld [vmem:[#allocation10 + $0x98] sm:$0xff]   ;;  %v1992_v17 = vld [vmem:[#allocation10 + $0xa0] sm:$0xff]   ;;  %v1993_v21 = vld [vmem:[#allocation10 + $0xa8] sm:$0xff]  }
 0x360   :  { %v1994_v22 = vld [vmem:[#allocation10 + $0xb0] sm:$0xff]   ;;  %v1370_v52 = vsel %vm438_vm1, %v1368_v49, %v1369_v50  ;;  %v1373_v1 = vrot.slane %v2512_v34, 1 }
 0x361   :  { %v1155_v44 = vpack.c.bf16 %v1152_v42, %v1151_v31  ;;  %v1156_v45 = vpack.c.bf16 %v1154_v43, %v1153_v30  ;;  %v1381_v56 = vmul.f32 %v1370_v52, %v2378_v14  ;;  %v2000_v14 = vld [vmem:[#allocation11 + $0xa0] sm:$0xff]  }
 0x362   :  { %v1380_v4 = vsel %vm438_vm1, %v1373_v1, %v1368_v49 }
 0x363   :  { %1853 = vmatprep.mubr.bf16.mxu0 %v1155_v44  ;;  %v1384_v9 = vmul.f32 %v1380_v4, %v2406_v48 }
 0x364   :  { %1854 = vmatmul.mubr.bf16.vlgmr.msra.gmra.mrb[4].mxu0 %v1156_v45 }
 0x365   :  { %1858 = vmatpush3.bf16.msra.mxu0 %v2477_v25  ;;  %1873 = vmatprep.mubr.bf16.mxu0 %v1115_v46  ;;  %v1371_v25 = vrot.slane %v2514_v7, 1 }
 0x366   :  { %1859 = vmatprep.subr.bf16.mxu0 %v1989_v32 }
 0x367   :  { %v1372_v54 = vsel %vm438_vm1, %v1369_v50, %v1371_v25  ;;  %v1374_v3 = vsel %vm438_vm1, %v1371_v25, %v1373_v1 }
 0x368   :  { %v1382_v57 = vmul.f32 %v1372_v54, %v2392_v29  ;;  %v2001_v29 = vld [vmem:[#allocation11 + $0xa8] sm:$0xff]   ;;  %v1383_v8 = vmul.f32 %v1374_v3, %v2404_v47 }
 0x369   :  { %1860 = vmatpush3.bf16.msra.mxu0 %v1989_v32 }
 0x36a   :  { %1861 = vmatprep.subr.bf16.mxu0 %v1990_v0  ;;  %v1385_v60 = vpack.c.bf16 %v1382_v57, %v1381_v56  ;;  %v1386_v11 = vpack.c.bf16 %v1384_v9, %v1383_v8 }
 0x36d   :  { %1862 = vmatpush3.bf16.msra.mxu0 %v1990_v0 }
 0x36e   :  { %1863 = vmatprep.subr.bf16.mxu0 %v1991_v16 }
 0x371   :  { %1864 = vmatpush3.bf16.msra.mxu0 %v1991_v16 }
 0x372   :  { %1865 = vmatprep.subr.bf16.mxu0 %v1992_v17 }
 0x375   :  { %1866 = vmatpush3.bf16.msra.mxu0 %v1992_v17 }
 0x376   :  { %1867 = vmatprep.subr.bf16.mxu0 %v1993_v21 }
 0x379   :  { %1868 = vmatpush3.bf16.msra.mxu0 %v1993_v21 }
 0x37a   :  { %1869 = vmatprep.subr.bf16.mxu0 %v1994_v22 }
 0x37d   :  { %1870 = vmatpush3.bf16.msra.mxu0 %v1994_v22 }
 0x37e   :  { %1871 = vmatprep.subr.bf16.mxu0 %v1995_v51 }
 0x381   :  { %1872 = vmatpush3.bf16.msra.mxu0 %v1995_v51 }
 0x382   :  { %1877 = vmatprep.subr.bf16.mxu0 %v1996_v55 }
 0x384   :  { %1874 = vmatmul.mubr.bf16.vlgmr.msra.gmra.mrb[4].mxu0 %v1116_v58 }
 0x385   :  { %1878 = vmatpush3.bf16.msra.mxu0 %v1996_v55  ;;  %1893 = vmatprep.mubr.bf16.mxu0 %v1385_v60 }
 0x386   :  { %1879 = vmatprep.subr.bf16.mxu0 %v1997_v59 }
 0x389   :  { %1880 = vmatpush3.bf16.msra.mxu0 %v1997_v59 }
 0x38a   :  { %1881 = vmatprep.subr.bf16.mxu0 %v1998_v61 }
 0x38d   :  { %1882 = vmatpush3.bf16.msra.mxu0 %v1998_v61 }
 0x38e   :  { %1883 = vmatprep.subr.bf16.mxu0 %v1999_v62 }
 0x391   :  { %1884 = vmatpush3.bf16.msra.mxu0 %v1999_v62 }
 0x392   :  { %1885 = vmatprep.subr.bf16.mxu0 %v2000_v14 }
 0x395   :  { %1886 = vmatpush3.bf16.msra.mxu0 %v2000_v14 }
 0x396   :  { %1887 = vmatprep.subr.bf16.mxu0 %v2001_v29 }
 0x399   :  { %1888 = vmatpush3.bf16.msra.mxu0 %v2001_v29 }
 0x39a   :  { %1889 = vmatprep.subr.bf16.mxu0 %v2002_v63 }
 0x39d   :  { %1890 = vmatpush3.bf16.msra.mxu0 %v2002_v63 }
 0x39e   :  { %1891 = vmatprep.subr.bf16.mxu0 %v2003_v2 }
 0x3a1   :  { %1892 = vmatpush3.bf16.msra.mxu0 %v2003_v2 }
 0x3a4   :  { %1894 = vmatmul.mubr.bf16.vlgmr.msra.gmra.mrb[4].mxu0 %v1386_v11 }
 0x477   :  { %v1895_v13 = vpop.f32.mrb[4].mxu0 }
 0x478   :  { %v1507_v15 = vadd.f32 %v1895_v13, %v2491_v39  ;;  %v1486_v18 = vpop.f32.mrb[5].mxu0 }
 0x479   :  { %v1505_v19 = vadd.f32 %v1486_v18, %v2486_v37  ;;  %v1896_v20 = vpop.f32.mrb[6].mxu0 }
 0x47a   :  { %v1517_v23 = vadd.f32 %v1626_v12, %v1507_v15  ;;  %v1508_v24 = vadd.f32 %v1896_v20, %v2495_v40  ;;  %v1489_v47 = vpop.f32.mrb[7].mxu0 }
 0x47b   :  { %v1515_v48 = vadd.f32 %v1626_v12, %v1505_v19  ;;  %v1506_v27 = vadd.f32 %v1489_v47, %v2489_v10 }
 0x47c   :  { %1521 = vst [vmem:[#allocation13 + $0x10] sm:$0xff] %v1517_v23  ;;  %v1518_v5 = vadd.f32 %v1626_v12, %v1508_v24 }
 0x47d   :  { %1519 = vst [vmem:[#allocation13] sm:$0xff] %v1515_v48  ;;  %v1516_v33 = vadd.f32 %v1626_v12, %v1506_v27 }
 0x47e   :  { %1522 = vst [vmem:[#allocation13 + $0x18] sm:$0xff] %v1518_v5 }
 0x47f   :  { %1520 = vst [vmem:[#allocation13 + $0x8] sm:$0xff] %v1516_v33 }
 0x480   :  { %2153 = shalt.err (!%p2150_p10)
}
 0x481   :  { %s2154_s0 = scalar_lea.hbm %s2573_s9, 512 }
 0x482   :  { %p2155_p11 = scmp.ne.s32.totalorder %s2573_s9, %s2154_s0  ;;  %p2158_p12 = scmp.lt.u32.totalorder %s2154_s0, %s2573_s9 }
 0x484   :  { %p2160_p13 = pnand %p2158_p12, %p2155_p11 }
 0x486   :  { %2163 = shalt.err (!%p2160_p13)
}
 0x487   :  { %1534 = dma.vmem_to_hbm [thread:$0]  %s1529_s16, 512, %s2573_s9, [#allocation4], %s2176_s21, %s2176_s21, %s2177_s22  }
 0x488   :  { %2172 = dma.done.wait [#allocation4], 512  }
 0x489   :  { %2173 = vsyncadd [#allocation4], 4294966784 }
 0x48a   :  { %1538 = vsyncpa [#allocation3], 1 }
 0x48b   :  { %1539 = vsyncpa [#allocation6], 1 }
 0x48c   :  { %1540 = vsyncpa [#allocation9], 1 }
 0x48d   :  { %1541 = vsyncpa [#allocation12], 1 }
 0x48e   :  { %1542 = vsyncpa [#allocation4], 1 }

</bundles_post_ra>
